<compile_context>
chip_gen: v7x
topology: tpu7x:2x2x1
jax: 0.10.0
libtpu: 0.0.40
codegen_flags: <defaults>
</compile_context>

<pallas_src>
import functools

import jax
import jax.numpy as jnp
from jax import lax
from jax.experimental import pallas as pl
from jax.experimental.pallas import tpu as pltpu


def _round_up(v, m):
    return ((v + m - 1) // m) * m


def _bce_dice_stats_kernel(x_ref, t_ref, out_ref, acc_ref, *,
                           nc, hw, need_row_mask, need_col_mask):
    """Accumulate per-row [sum BCE, sum p*t, sum p, sum t] across the HW axis."""
    s = pl.program_id(0)      # parallel HW split (size > 1 only when a single row tile)
    i = pl.program_id(1)      # parallel row-tile index
    k = pl.program_id(2)      # HW reduction step within the split (innermost)

    @pl.when(k == 0)
    def _():
        acc_ref[...] = jnp.zeros_like(acc_ref)

    x = x_ref[...].astype(jnp.float32)
    t = t_ref[...].astype(jnp.float32)
    row_tile, hw_tile = x.shape

    # In-kernel masking of ragged tail tiles (replaces wrapper-side jnp.pad).
    # Only emitted (statically) when the slab is not tile-aligned on that axis.
    if need_col_mask or need_row_mask:
        mask = None
        if need_col_mask:
            col0 = (s * pl.num_programs(2) + k) * hw_tile
            col = lax.broadcasted_iota(jnp.int32, x.shape, 1) + col0
            mask = col < hw
        if need_row_mask:
            row = lax.broadcasted_iota(jnp.int32, x.shape, 0) + i * row_tile
            rmask = row < nc
            mask = rmask if mask is None else (mask & rmask)
        # (x=-100, t=0) contributes 0 to BCE/intersection/t-sum and only an f32
        # subnormal (~3.8e-44 << epsilon) to the p-sum.
        x = jnp.where(mask, x, -100.0)
        t = jnp.where(mask, t, 0.0)

    # Clipping logits to [-100, 100] makes the with-logits BCE below match
    # nn.BCELoss's log clamp exactly in f32, without per-element max() clamps.
    x = jnp.clip(x, -100.0, 100.0)

    e = jnp.exp(-jnp.abs(x))                               # exp(-|x|) in (0, 1]  (EUP)
    denom = 1.0 + e
    log_p = jnp.minimum(x, 0.0) - jnp.log(denom)           # log(sigmoid(x)) >= -100
    # sigmoid(x): one EUP vrcp instead of a full-precision divide.
    p = jnp.where(x >= 0.0, 1.0, e) * pl.reciprocal(denom, approx=True)

    # BCE with-logits form: == -(t*log(p) + (1-t)*log(1-p)) with both logs >= -100.
    bce_elem = (1.0 - t) * x - log_p

    acc_ref[:, 0:1] += jnp.sum(bce_elem, axis=-1, keepdims=True)
    acc_ref[:, 1:2] += jnp.sum(p * t, axis=-1, keepdims=True)
    acc_ref[:, 2:3] += jnp.sum(p, axis=-1, keepdims=True)
    acc_ref[:, 3:4] += jnp.sum(t, axis=-1, keepdims=True)

    @pl.when(k == pl.num_programs(2) - 1)
    def _():
        out_ref[0] = acc_ref[...]


@functools.partial(
    jax.jit,
    static_argnames=("epsilon", "bce_weight", "dice_weight", "row_tile", "hw_tile"))
def bce_dice_loss(x, target, *, epsilon=1e-07, bce_weight=0.5, dice_weight=0.5,
                  row_tile=None, hw_tile=None):
    """Pallas implementation of BCEDiceLoss.forward(input, target)."""
    n, c, h, w = x.shape
    nc, hw = n * c, h * w

    # ---- Tile selection -----------------------------------------------------
    # Rows (sublane axis): multiple of 8, <= 128; prefer >= 2 row tiles so the
    # "parallel" row axis can shard across v7x's two TensorCores.
    if row_tile is None:
        row_tile = min(_round_up(nc, 8), 128)
        if nc > 8 and pl.cdiv(nc, row_tile) < 2:
            row_tile = _round_up(pl.cdiv(nc, 2), 8)
    # HW (lane axis): sized from a VMEM byte budget (~2 MiB per input buffer ->
    # 2 inputs x 2 pipeline buffers ~= 8 MiB), multiple of 128, capped at the data.
    if hw_tile is None:
        budget_elems = (2 * 1024 * 1024) // 4              # f32 logits buffer
        hw_tile = max(128, (budget_elems // row_tile) // 128 * 128)
        hw_tile = min(hw_tile, _round_up(hw, 128))

    row_tiles = pl.cdiv(nc, row_tile)
    hw_steps_total = pl.cdiv(hw, hw_tile)

    # v7x megacore: if the row axis has a single tile, split the HW reduction into
    # two parallel partial-stat columns (only when the split is exact so no grid
    # step is fully out of bounds); partials are summed in JAX.
    num_splits = 2 if (row_tiles == 1 and hw_steps_total >= 2
                       and hw_steps_total % 2 == 0) else 1
    ksteps = hw_steps_total // num_splits

    nc_out = row_tiles * row_tile
    need_row_mask = nc_out > nc
    need_col_mask = num_splits * ksteps * hw_tile > hw

    x2 = x.reshape(nc, hw)
    t2 = target.reshape(nc, hw)     # native dtype; cast to f32 happens in-kernel

    kernel = functools.partial(
        _bce_dice_stats_kernel, nc=nc, hw=hw,
        need_row_mask=need_row_mask, need_col_mask=need_col_mask)

    cost = pl.CostEstimate(
        flops=16 * nc * hw,
        transcendentals=3 * nc * hw,
        bytes_accessed=(x2.size * x2.dtype.itemsize
                        + t2.size * t2.dtype.itemsize
                        + num_splits * nc_out * 4 * 4),
    )

    stats = pl.pallas_call(
        kernel,
        out_shape=jax.ShapeDtypeStruct((num_splits, nc_out, 4), jnp.float32),
        grid_spec=pltpu.PrefetchScalarGridSpec(
            num_scalar_prefetch=0,
            grid=(num_splits, row_tiles, ksteps),
            in_specs=[
                pl.BlockSpec((row_tile, hw_tile),
                             lambda s, i, k: (i, s * ksteps + k)),
                pl.BlockSpec((row_tile, hw_tile),
                             lambda s, i, k: (i, s * ksteps + k)),
            ],
            # Output block is resident across the HW reduction axis (k-invariant).
            out_specs=pl.BlockSpec((1, row_tile, 4), lambda s, i, k: (s, i, 0)),
            scratch_shapes=[pltpu.VMEM((row_tile, 4), jnp.float32)],
        ),
        compiler_params=pltpu.CompilerParams(
            dimension_semantics=("parallel", "parallel", "arbitrary"),
            vmem_limit_bytes=32 * 1024 * 1024,
        ),
        cost_estimate=cost,
    )(x2, t2)

    stats = jnp.sum(stats, axis=0)[:nc]       # merge HW splits, drop padded rows
    bce_sum = stats[:, 0]
    intersection = stats[:, 1]
    p_sum = stats[:, 2]
    t_sum = stats[:, 3]

    # nn.BCELoss default reduction='mean' -> mean over every (real) element.
    bce_loss = jnp.sum(bce_sum) / jnp.float32(nc * hw)
    dice_score = (2.0 * intersection + epsilon) / (p_sum + t_sum + epsilon)  # (N*C,)
    dice_loss = 1.0 - jnp.mean(dice_score)
    return bce_weight * bce_loss + dice_weight * dice_loss


def _reference(x, target, epsilon=1e-07, bce_weight=0.5, dice_weight=0.5):
    """Pure-JAX reference mirroring the PyTorch module (for sanity check)."""
    p = jax.nn.sigmoid(x.astype(jnp.float32))
    t = target.astype(jnp.float32)
    log_p = jnp.maximum(jnp.log(p), -100.0)
    log_1mp = jnp.maximum(jnp.log(1.0 - p), -100.0)
    bce = jnp.mean(-(t * log_p + (1.0 - t) * log_1mp))
    inter = jnp.sum(p * t, axis=(2, 3))
    dice = (2.0 * inter + epsilon) / (
        jnp.sum(p, axis=(2, 3)) + jnp.sum(t, axis=(2, 3)) + epsilon)
    return bce_weight * bce + dice_weight * (1.0 - jnp.mean(dice))


if __name__ == "__main__":
    key = jax.random.PRNGKey(0)
    kx, kt = jax.random.split(key)

    # approx reciprocal in the kernel carries ~2^-12 relative error on p,
    # so compare with a slightly looser tolerance than f32 exactness.
    def check(xv, tv, name, **kw):
        got = jax.block_until_ready(bce_dice_loss(xv, tv, **kw))
        want = _reference(xv, tv)
        assert jnp.allclose(got, want, rtol=1e-3, atol=1e-3), (name, got, want)

    # 1) Aligned shape, auto tiling (single step, no masking).
    x = jax.random.normal(kx, (2, 4, 16, 16), dtype=jnp.float32)                 # logits
    t = (jax.random.uniform(kt, (2, 4, 16, 16)) > 0.5).astype(jnp.float32)       # mask
    check(x, t, "aligned/auto")

    # 2) Single row tile + even HW steps -> parallel HW-split path (v7x megacore).
    check(x, t, "hw-split", row_tile=8, hw_tile=128)

    # 3) Multi-step accumulation inside each split.
    x3 = jax.random.normal(kx, (2, 4, 16, 32), dtype=jnp.float32)
    t3 = (jax.random.uniform(kt, (2, 4, 16, 32)) > 0.5).astype(jnp.float32)
    check(x3, t3, "multi-k", row_tile=8, hw_tile=128)

    # 4) Unaligned rows+lanes with bool targets (in-kernel masking, native dtype).
    x4 = jax.random.normal(kx, (2, 3, 10, 10), dtype=jnp.float32)
    t4 = jax.random.uniform(kt, (2, 3, 10, 10)) > 0.5
    check(x4, t4, "ragged/bool-target")

    # 5) Two parallel row tiles with a ragged row tail.
    x5 = jax.random.normal(kx, (2, 12, 16, 16), dtype=jnp.float32)
    t5 = (jax.random.uniform(kt, (2, 12, 16, 16)) > 0.5).astype(jnp.float32)
    check(x5, t5, "two-row-tiles")

    print("KERNEL_OK")
</pallas_src>

<mosaic_0001>
module attributes {stable_mosaic.version = 11 : i64} {
  func.func @_bce_dice_stats_kernel(%arg0: i32, %arg1: i32, %arg2: i32, %arg3: memref<8x256xf32, #tpu.memory_space<vmem>>, %arg4: memref<8x256xf32, #tpu.memory_space<vmem>>, %arg5: memref<1x8x4xf32, #tpu.memory_space<vmem>>, %arg6: memref<8x4xf32, #tpu.memory_space<vmem>>) attributes {dimension_semantics = [#tpu.dimension_semantics<parallel>, #tpu.dimension_semantics<parallel>, #tpu.dimension_semantics<arbitrary>], iteration_bounds = array<i64: 1, 1, 1>, scalar_prefetch = 0 : i64, scratch_operands = 1 : i64, tpu.core_type = #tpu.core_type<tc>, window_params = [{transform_indices = @transform_0, window_bounds = array<i64: 8, 256>}, {transform_indices = @transform_1, window_bounds = array<i64: 8, 256>}, {transform_indices = @transform_2, window_bounds = array<i64: 1, 8, 4>}]} {
    %c0_i32 = arith.constant 0 : i32
    %0 = arith.cmpi eq, %arg2, %c0_i32 : i32
    %1 = arith.extui %0 : i1 to i32
    %c0_i32_0 = arith.constant 0 : i32
    %2 = arith.cmpi ne, %1, %c0_i32_0 : i32
    scf.if %2 {
      %cst_30 = arith.constant 0.000000e+00 : f32
      %53 = vector.broadcast %cst_30 : f32 to vector<8x4xf32>
      %c0_31 = arith.constant 0 : index
      %c0_32 = arith.constant 0 : index
      %54 = vector.load %arg6[%c0_31, %c0_32] : memref<8x4xf32, #tpu.memory_space<vmem>>, vector<8x4xf32>
      tpu.vector_store %arg6[%c0_31, %c0_32], %53 {strides = array<i32>} : memref<8x4xf32, #tpu.memory_space<vmem>>, vector<8x4xf32>,
    } else {
    }
    %c0 = arith.constant 0 : index
    %c0_1 = arith.constant 0 : index
    %3 = vector.load %arg3[%c0, %c0_1] : memref<8x256xf32, #tpu.memory_space<vmem>>, vector<8x256xf32>
    %c0_2 = arith.constant 0 : index
    %c0_3 = arith.constant 0 : index
    %4 = vector.load %arg4[%c0_2, %c0_3] : memref<8x256xf32, #tpu.memory_space<vmem>>, vector<8x256xf32>
    %cst = arith.constant -1.000000e+02 : f32
    %cst_4 = arith.constant 1.000000e+02 : f32
    %5 = vector.broadcast %cst : f32 to vector<8x256xf32>
    %6 = arith.maximumf %5, %3 : vector<8x256xf32>
    %7 = vector.broadcast %cst_4 : f32 to vector<8x256xf32>
    %8 = arith.minimumf %7, %6 : vector<8x256xf32>
    %9 = math.absf %8 : vector<8x256xf32>
    %cst_5 = arith.constant 0.000000e+00 : f32
    %10 = vector.broadcast %cst_5 : f32 to vector<8x256xf32>
    %11 = arith.subf %10, %9 : vector<8x256xf32>
    %12 = math.exp %11 : vector<8x256xf32>
    %cst_6 = arith.constant 1.000000e+00 : f32
    %13 = vector.broadcast %cst_6 : f32 to vector<8x256xf32>
    %14 = arith.addf %13, %12 : vector<8x256xf32>
    %cst_7 = arith.constant 0.000000e+00 : f32
    %15 = vector.broadcast %cst_7 : f32 to vector<8x256xf32>
    %16 = arith.minimumf %8, %15 : vector<8x256xf32>
    %17 = math.log %14 : vector<8x256xf32>
    %18 = arith.subf %16, %17 : vector<8x256xf32>
    %cst_8 = arith.constant 0.000000e+00 : f32
    %19 = vector.broadcast %cst_8 : f32 to vector<8x256xf32>
    %20 = arith.cmpf oge, %8, %19 : vector<8x256xf32>
    %cst_9 = arith.constant 1.000000e+00 : f32
    %21 = vector.broadcast %cst_9 : f32 to vector<8x256xf32>
    %22 = arith.select %20, %21, %12 : vector<8x256xi1>, vector<8x256xf32>
    %23 = tpu.reciprocal %14 {approx = true} : vector<8x256xf32> -> vector<8x256xf32>
    %24 = arith.mulf %22, %23 : vector<8x256xf32>
    %cst_10 = arith.constant 1.000000e+00 : f32
    %25 = vector.broadcast %cst_10 : f32 to vector<8x256xf32>
    %26 = arith.subf %25, %4 : vector<8x256xf32>
    %27 = arith.mulf %26, %8 : vector<8x256xf32>
    %28 = arith.subf %27, %18 : vector<8x256xf32>
    %c0_11 = arith.constant 0 : index
    %c0_12 = arith.constant 0 : index
    %29 = vector.load %arg6[%c0_11, %c0_12] : memref<8x4xf32, #tpu.memory_space<vmem>>, vector<8x1xf32>
    %cst_13 = arith.constant dense<0.000000e+00> : vector<8xf32>
    %30 = vector.multi_reduction <add>, %28, %cst_13 [1] : vector<8x256xf32> to vector<8xf32>
    %31 = vector.shape_cast %30 : vector<8xf32> to vector<8x1xf32>
    %32 = arith.addf %29, %31 : vector<8x1xf32>
    %c0_14 = arith.constant 0 : index
    %c0_15 = arith.constant 0 : index
    %33 = vector.load %arg6[%c0_14, %c0_15] : memref<8x4xf32, #tpu.memory_space<vmem>>, vector<8x1xf32>
    tpu.vector_store %arg6[%c0_14, %c0_15], %32 {strides = array<i32>} : memref<8x4xf32, #tpu.memory_space<vmem>>, vector<8x1xf32>,
    %c0_16 = arith.constant 0 : index
    %c1 = arith.constant 1 : index
    %34 = vector.load %arg6[%c0_16, %c1] : memref<8x4xf32, #tpu.memory_space<vmem>>, vector<8x1xf32>
    %35 = arith.mulf %24, %4 : vector<8x256xf32>
    %cst_17 = arith.constant dense<0.000000e+00> : vector<8xf32>
    %36 = vector.multi_reduction <add>, %35, %cst_17 [1] : vector<8x256xf32> to vector<8xf32>
    %37 = vector.shape_cast %36 : vector<8xf32> to vector<8x1xf32>
    %38 = arith.addf %34, %37 : vector<8x1xf32>
    %c0_18 = arith.constant 0 : index
    %c1_19 = arith.constant 1 : index
    %39 = vector.load %arg6[%c0_18, %c1_19] : memref<8x4xf32, #tpu.memory_space<vmem>>, vector<8x1xf32>
    tpu.vector_store %arg6[%c0_18, %c1_19], %38 {strides = array<i32>} : memref<8x4xf32, #tpu.memory_space<vmem>>, vector<8x1xf32>,
    %c0_20 = arith.constant 0 : index
    %c2 = arith.constant 2 : index
    %40 = vector.load %arg6[%c0_20, %c2] : memref<8x4xf32, #tpu.memory_space<vmem>>, vector<8x1xf32>
    %cst_21 = arith.constant dense<0.000000e+00> : vector<8xf32>
    %41 = vector.multi_reduction <add>, %24, %cst_21 [1] : vector<8x256xf32> to vector<8xf32>
    %42 = vector.shape_cast %41 : vector<8xf32> to vector<8x1xf32>
    %43 = arith.addf %40, %42 : vector<8x1xf32>
    %c0_22 = arith.constant 0 : index
    %c2_23 = arith.constant 2 : index
    %44 = vector.load %arg6[%c0_22, %c2_23] : memref<8x4xf32, #tpu.memory_space<vmem>>, vector<8x1xf32>
    tpu.vector_store %arg6[%c0_22, %c2_23], %43 {strides = array<i32>} : memref<8x4xf32, #tpu.memory_space<vmem>>, vector<8x1xf32>,
    %c0_24 = arith.constant 0 : index
    %c3 = arith.constant 3 : index
    %45 = vector.load %arg6[%c0_24, %c3] : memref<8x4xf32, #tpu.memory_space<vmem>>, vector<8x1xf32>
    %cst_25 = arith.constant dense<0.000000e+00> : vector<8xf32>
    %46 = vector.multi_reduction <add>, %4, %cst_25 [1] : vector<8x256xf32> to vector<8xf32>
    %47 = vector.shape_cast %46 : vector<8xf32> to vector<8x1xf32>
    %48 = arith.addf %45, %47 : vector<8x1xf32>
    %c0_26 = arith.constant 0 : index
    %c3_27 = arith.constant 3 : index
    %49 = vector.load %arg6[%c0_26, %c3_27] : memref<8x4xf32, #tpu.memory_space<vmem>>, vector<8x1xf32>
    tpu.vector_store %arg6[%c0_26, %c3_27], %48 {strides = array<i32>} : memref<8x4xf32, #tpu.memory_space<vmem>>, vector<8x1xf32>,
    %c0_i32_28 = arith.constant 0 : i32
    %50 = arith.cmpi eq, %arg2, %c0_i32_28 : i32
    %51 = arith.extui %50 : i1 to i32
    %c0_i32_29 = arith.constant 0 : i32
    %52 = arith.cmpi ne, %51, %c0_i32_29 : i32
    scf.if %52 {
      %c0_30 = arith.constant 0 : index
      %c0_31 = arith.constant 0 : index
      %53 = vector.load %arg6[%c0_30, %c0_31] : memref<8x4xf32, #tpu.memory_space<vmem>>, vector<8x4xf32>
      %c0_32 = arith.constant 0 : index
      %c0_33 = arith.constant 0 : index
      %c0_34 = arith.constant 0 : index
      %54 = vector.load %arg5[%c0_32, %c0_33, %c0_34] : memref<1x8x4xf32, #tpu.memory_space<vmem>>, vector<1x8x4xf32>
      %55 = vector.shape_cast %54 : vector<1x8x4xf32> to vector<8x4xf32>
      %56 = vector.shape_cast %53 : vector<8x4xf32> to vector<1x8x4xf32>
      tpu.vector_store %arg5[%c0_32, %c0_33, %c0_34], %56 {strides = array<i32>} : memref<1x8x4xf32, #tpu.memory_space<vmem>>, vector<1x8x4xf32>,
    } else {
    }
    return
  }
  func.func @transform_0(%arg0: i32, %arg1: i32, %arg2: i32) -> (i32, i32) {
    %c1_i32 = arith.constant 1 : i32
    %0 = arith.muli %arg0, %c1_i32 : i32
    %1 = arith.addi %0, %arg2 : i32
    %c0_i32 = arith.constant 0 : i32
    return %arg1, %1 : i32, i32
  }
  func.func @transform_1(%arg0: i32, %arg1: i32, %arg2: i32) -> (i32, i32) {
    %c1_i32 = arith.constant 1 : i32
    %0 = arith.muli %arg0, %c1_i32 : i32
    %1 = arith.addi %0, %arg2 : i32
    %c0_i32 = arith.constant 0 : i32
    return %arg1, %1 : i32, i32
  }
  func.func @transform_2(%arg0: i32, %arg1: i32, %arg2: i32) -> (i32, i32, i32) {
    %c0_i32 = arith.constant 0 : i32
    %c0_i32_0 = arith.constant 0 : i32
    return %arg0, %arg1, %c0_i32 : i32, i32, i32
  }
}

</mosaic_0001>

<bundles_post_ra>
// kernel: bce_dice_loss.1
= control target key start
LH: loop header
LB: loop body
LE: loop exit
PB: predicated region body
PF: predicated region fallthrough
CT: control target
= control target key end

     0   :  { %vm59_vm0 = vcmask 31744   ;;  %v168_v2 = vmov 0.0   ;;  %vm106_vm3 = vcmask 7168   ;;  %vm115_vm4 = vcmask 15368   ;;  %s201_s0 = inlined_call_operand.vmem [shape: f32[8,256], index: 0, kind: input, shape index: {}]   ;;  %s202_s1 = inlined_call_operand.vmem [shape: f32[8,256], index: 1, kind: input, shape index: {}]   ;;  %s203_s2 = inlined_call_operand.vmem [shape: f32[1,8,4], index: 2, kind: output, shape index: {}]  }
   0x1   :  { %v61_v0 = vld [vmem:[%s201_s0] sm:$0xff]  ;;  %v62_v1 = vld [vmem:[%s201_s0 + $0x8] sm:$0xff]  ;;  %60 = vst.msk [vmem:[#allocation2] sm:$0xff] %vm59_vm0, %v168_v2  ;;  %vm122_vm5 = vcmask 23568   ;;  %vm129_vm6 = vcmask 31768  }
   0x2   :  { %v153_v3 = vclamps-f32 %v61_v0, 100.0  ;;  %v154_v4 = vclamps-f32 %v62_v1, 100.0  ;;  %v63_v15 = vld [vmem:[%s202_s1] sm:$0xff]  ;;  %v64_v16 = vld [vmem:[%s202_s1 + $0x8] sm:$0xff] }
   0x3   :  { %v95_v17 = vsub.f32 1.0, %v63_v15  ;;  %v96_v18 = vsub.f32 1.0, %v64_v16  ;;  %v125_v41 = vadd.f32 %v64_v16, %v63_v15 }
   0x4   :  { %v69_v5 = vand.u32 2147483647, %v153_v3  ;;  %v70_v6 = vand.u32 2147483647, %v154_v4  ;;  %vm87_vm1 = vcmp.ge.f32.partialorder %v153_v3, 0.0  ;;  %vm88_vm2 = vcmp.ge.f32.partialorder %v154_v4, 0.0 }
   0x5   :  { %v79_v19 = vmin.f32 %v153_v3, 0.0  ;;  %v80_v21 = vmin.f32 %v154_v4, 0.0  ;;  %v97_v25 = vmul.f32 %v153_v3, %v95_v17  ;;  %v98_v29 = vmul.f32 %v154_v4, %v96_v18 }
   0x6   :  { %v71_v7 = vsub.f32 0.0, %v69_v5  ;;  %v72_v8 = vsub.f32 0.0, %v70_v6 }
   0x8   :  { %v73_v9 = vmul.f32 1.442695, %v71_v7  ;;  %v75_v10 = vmul.f32 1.442695, %v72_v8  ;;  %v101_v43 = vld [vmem:[#allocation2] sm:$0xff] }
   0xa   :  { %156 = vpow2.f32 %v73_v9 }
   0xb   :  { %158 = vpow2.f32 %v75_v10 }
  0x14   :  { %v157_v11 = vpop.eup %156 }
  0x15   :  { %v159_v12 = vpop.eup %158  ;;  %v77_v13 = vadd.f32 1.0, %v157_v11  ;;  %v89_v22 = vsel %vm87_vm1, 1.0, %v157_v11 }
  0x16   :  { %v78_v14 = vadd.f32 1.0, %v159_v12  ;;  %v90_v26 = vsel %vm88_vm2, 1.0, %v159_v12 }
  0x17   :  { %160 = vlog2.f32 %v77_v13 }
  0x18   :  { %162 = vlog2.f32 %v78_v14 }
  0x19   :  { %164 = vrcp.f32 %v77_v13 }
  0x1a   :  { %166 = vrcp.f32 %v78_v14 }
  0x21   :  { %v161_v20 = vpop.eup %160 }
  0x22   :  { %v163_v23 = vpop.eup %162  ;;  %v82_v24 = vmul.f32 0.6931472, %v161_v20 }
  0x23   :  { %v165_v27 = vpop.eup %164  ;;  %v84_v28 = vmul.f32 0.6931472, %v163_v23 }
  0x24   :  { %v167_v30 = vpop.eup %166  ;;  %v85_v31 = vsub.f32 %v79_v19, %v82_v24  ;;  %v93_v32 = vmul.f32 %v165_v27, %v89_v22 }
  0x25   :  { %v86_v33 = vsub.f32 %v80_v21, %v84_v28  ;;  %v94_v34 = vmul.f32 %v167_v30, %v90_v26 }
  0x26   :  { %v99_v35 = vsub.f32 %v97_v25, %v85_v31  ;;  %v109_v37 = vmul.f32 %v93_v32, %v63_v15 }
  0x27   :  { %v100_v36 = vsub.f32 %v98_v29, %v86_v33  ;;  %v110_v38 = vmul.f32 %v94_v34, %v64_v16  ;;  %v118_v39 = vadd.f32 %v94_v34, %v93_v32 }
  0x29   :  { %v102_v40 = vadd.f32 %v100_v36, %v99_v35  ;;  %119 = vadd.xlane.f32.xlu1 %v118_v39  ;;  %v111_v42 = vadd.f32 %v110_v38, %v109_v37 }
  0x2b   :  { %103 = vadd.xlane.f32.xlu0 %v102_v40 }
  0x2d   :  { %126 = vadd.xlane.f32.xlu1 %v125_v41 }
  0x2f   :  { %112 = vadd.xlane.f32.xlu0 %v111_v42 }
  0xb6   :  { %v120_v49 = vpop.xlane.xlu1 %119 }
  0xb8   :  { %v104_v44 = vpop.xlane.xlu0 %103 }
  0xb9   :  { %v105_v45 = vadd.f32 %v104_v44, %v101_v43 }
  0xba   :  { %v127_v52 = vpop.xlane.xlu1 %126 }
  0xbb   :  { %107 = vst.msk [vmem:[#allocation2] sm:$0xff] %vm106_vm3, %v105_v45 }
  0xbc   :  { %v113_v46 = vpop.xlane.xlu0 %112 }
  0xc2   :  { %v108_v47 = vld [vmem:[#allocation2] sm:$0xff] }
  0xc3   :  { %v114_v48 = vadd.f32 %v113_v46, %v108_v47 }
  0xc5   :  { %116 = vst.msk [vmem:[#allocation2] sm:$0xff] %vm115_vm4, %v114_v48 }
  0xcc   :  { %v117_v50 = vld [vmem:[#allocation2] sm:$0xff] }
  0xcd   :  { %v121_v51 = vadd.f32 %v120_v49, %v117_v50 }
  0xcf   :  { %123 = vst.msk [vmem:[#allocation2] sm:$0xff] %vm122_vm5, %v121_v51 }
  0xd6   :  { %v124_v53 = vld [vmem:[#allocation2] sm:$0xff] }
  0xd7   :  { %v128_v54 = vadd.f32 %v127_v52, %v124_v53 }
  0xd9   :  { %130 = vst.msk [vmem:[#allocation2] sm:$0xff] %vm129_vm6, %v128_v54 }
  0xe0   :  { %v134_v55 = vld [vmem:[#allocation2] sm:$0xff] }
  0xe1   :  { %136 = vst.msk [vmem:[%s203_s2] sm:$0xff] %vm59_vm0, %v134_v55 }

</bundles_post_ra>
